<compile_context>
chip_gen: v7x
topology: tpu7x:2x2x1
jax: 0.10.0
libtpu: 0.0.40
codegen_flags: <defaults>
</compile_context>

<pallas_src>
import functools
import math

import jax
import jax.numpy as jnp
from jax.experimental import pallas as pl
from jax.experimental.pallas import tpu as pltpu


def _layernorm(x, gamma, beta, eps=1e-5):
    mu = jnp.mean(x, axis=-1, keepdims=True)
    var = jnp.mean((x - mu) ** 2, axis=-1, keepdims=True)
    return (x - mu) * jax.lax.rsqrt(var + eps) * gamma + beta


# ---------------------------------------------------------------------------
# Kernel 1: transformer blocks, one layer per grid step (weights streamed
# layer-by-layer from HBM), residual stream carried in VMEM scratch.
# Final LayerNorm fused into the last layer step.
# ---------------------------------------------------------------------------
def blocks_kernel(x_ref,
                  ln1g_ref, ln1b_ref, wqkv_ref, bqkv_ref, wo_ref, bo_ref,
                  ln2g_ref, ln2b_ref, w1_ref, b1_ref, w2_ref, b2_ref,
                  flng_ref, flnb_ref,
                  out_ref, x_sc, *, num_heads):
    l = pl.program_id(1)
    n_layers = pl.num_programs(1)
    T, D = x_sc.shape
    H = num_heads
    Dh = D // H
    scale = 1.0 / math.sqrt(Dh)

    @pl.when(l == 0)
    def _():
        x_sc[...] = x_ref[0]            # load embeddings once per batch row

    x = x_sc[...]                       # (T, D) f32 residual stream

    # additive causal bias, hoisted (one select per layer, none per head)
    row = jax.lax.broadcasted_iota(jnp.int32, (T, T), 0)
    col = jax.lax.broadcasted_iota(jnp.int32, (T, T), 1)
    mask_bias = jnp.where(row >= col, 0.0, -1e30).astype(jnp.float32)

    def split_heads(z):                 # (T, D) -> (H, T, Dh)
        return jnp.stack([z[:, h * Dh:(h + 1) * Dh] for h in range(H)], axis=0)

    # ---- causal multi-head self-attention (pre-LN), heads fused ----
    h1 = _layernorm(x, ln1g_ref[0], ln1b_ref[0])
    qkv = jnp.dot(h1.astype(jnp.bfloat16), wqkv_ref[0],
                  preferred_element_type=jnp.float32) + bqkv_ref[0]   # (T, 3D)
    q = split_heads(qkv[:, 0 * D:1 * D]).astype(jnp.bfloat16)
    k = split_heads(qkv[:, 1 * D:2 * D]).astype(jnp.bfloat16)
    v = split_heads(qkv[:, 2 * D:3 * D]).astype(jnp.bfloat16)

    s = jnp.einsum('hqd,hkd->hqk', q, k,
                   preferred_element_type=jnp.float32)                # (H,T,T)
    s = s * scale + mask_bias[None, :, :]
    s = s - jnp.max(s, axis=-1, keepdims=True)                        # f32 math
    e = jnp.exp(s)
    p = e * pl.reciprocal(jnp.sum(e, axis=-1, keepdims=True), approx=True)
    o = jnp.einsum('hqk,hkd->hqd', p.astype(jnp.bfloat16), v,
                   preferred_element_type=jnp.float32)                # (H,T,Dh)
    o = jnp.concatenate([o[h] for h in range(H)], axis=-1)            # (T, D)
    attn = jnp.dot(o.astype(jnp.bfloat16), wo_ref[0],
                   preferred_element_type=jnp.float32) + bo_ref[0]
    x = x + attn

    # ---- MLP (pre-LN, 4x expansion, GELU) ----
    h2 = _layernorm(x, ln2g_ref[0], ln2b_ref[0])
    m = jnp.dot(h2.astype(jnp.bfloat16), w1_ref[0],
                preferred_element_type=jnp.float32) + b1_ref[0]
    m = jax.nn.gelu(m, approximate=True)
    m = jnp.dot(m.astype(jnp.bfloat16), w2_ref[0],
                preferred_element_type=jnp.float32) + b2_ref[0]
    x = x + m

    x_sc[...] = x

    @pl.when(l == n_layers - 1)
    def _():
        out_ref[0] = _layernorm(x, flng_ref[...], flnb_ref[...])


# ---------------------------------------------------------------------------
# Kernel 2: per-batch-row softmax stats (running max / sum-exp) over vocab
# tiles — vocab axis is the (arbitrary) reduction grid axis.
# ---------------------------------------------------------------------------
def vocab_stats_kernel(x_ref, wv_ref, bv_ref, m_ref, l_ref, m_sc, l_sc):
    j = pl.program_id(1)
    T = x_ref.shape[1]

    @pl.when(j == 0)
    def _():
        m_sc[...] = jnp.full((T, 1), -jnp.inf, jnp.float32)
        l_sc[...] = jnp.zeros((T, 1), jnp.float32)

    logits = jnp.dot(x_ref[0].astype(jnp.bfloat16), wv_ref[...],
                     preferred_element_type=jnp.float32) + bv_ref[...]
    m_prev = m_sc[...]
    m_new = jnp.maximum(m_prev, jnp.max(logits, axis=-1, keepdims=True))
    l_sc[...] = (jnp.exp(m_prev - m_new) * l_sc[...]
                 + jnp.sum(jnp.exp(logits - m_new), axis=-1, keepdims=True))
    m_sc[...] = m_new

    @pl.when(j == pl.num_programs(1) - 1)
    def _():
        m_ref[0] = m_sc[...]
        l_ref[0] = l_sc[...]


# ---------------------------------------------------------------------------
# Kernel 3: normalized probabilities per vocab tile (lane-dense output),
# rounded to 4 decimals.
# ---------------------------------------------------------------------------
def vocab_probs_kernel(x_ref, wv_ref, bv_ref, m_ref, l_ref, out_ref):
    logits = jnp.dot(x_ref[0].astype(jnp.bfloat16), wv_ref[...],
                     preferred_element_type=jnp.float32) + bv_ref[...]
    probs = jnp.exp(logits - m_ref[0]) * pl.reciprocal(l_ref[0], approx=False)
    out_ref[0] = jnp.round(probs * 1e4) * 1e-4


def init_params(key, vocab_size, context_len, model_dim, num_blocks, num_heads):
    D, L, V = model_dim, num_blocks, vocab_size
    ks = jax.random.split(key, 8)
    std = 0.02
    params = dict(
        tok_emb=jax.random.normal(ks[0], (V, D), jnp.float32) * std,
        pos_emb=jax.random.normal(ks[1], (context_len, D), jnp.float32) * std,
        ln1g=jnp.ones((L, D), jnp.float32),
        ln1b=jnp.zeros((L, D), jnp.float32),
        wqkv=jax.random.normal(ks[2], (L, D, 3 * D), jnp.float32) * std,
        bqkv=jnp.zeros((L, 3 * D), jnp.float32),
        wo=jax.random.normal(ks[3], (L, D, D), jnp.float32) * std,
        bo=jnp.zeros((L, D), jnp.float32),
        ln2g=jnp.ones((L, D), jnp.float32),
        ln2b=jnp.zeros((L, D), jnp.float32),
        w1=jax.random.normal(ks[4], (L, D, 4 * D), jnp.float32) * std,
        b1=jnp.zeros((L, 4 * D), jnp.float32),
        w2=jax.random.normal(ks[5], (L, 4 * D, D), jnp.float32) * std,
        b2=jnp.zeros((L, D), jnp.float32),
        flng=jnp.ones((1, D), jnp.float32),
        flnb=jnp.zeros((1, D), jnp.float32),
        wv=jax.random.normal(ks[6], (D, V), jnp.float32) * std,
        bv=jnp.zeros((1, V), jnp.float32),
    )
    return params


def gpt_forward(context, params, *, num_blocks, num_heads, tile_v=128):
    B, T = context.shape
    V, D = params['tok_emb'].shape
    L = num_blocks

    # glue: embedding gathers + positional add (plain JAX)
    tok = jnp.take(params['tok_emb'], context, axis=0)            # (B, T, D)
    pos = params['pos_emb'][:T]                                    # (T, D)
    embeds = (tok + pos[None, :, :]).astype(jnp.float32)

    # bf16 weight streaming (f32 accumulation inside the kernels)
    wqkv = params['wqkv'].astype(jnp.bfloat16)
    wo = params['wo'].astype(jnp.bfloat16)
    w1 = params['w1'].astype(jnp.bfloat16)
    w2 = params['w2'].astype(jnp.bfloat16)

    # per-layer vectors -> (L, 1, dim) so each layer's slice is a clean block
    r3 = lambda a: a.reshape(L, 1, a.shape[-1])
    ln1g, ln1b = r3(params['ln1g']), r3(params['ln1b'])
    ln2g, ln2b = r3(params['ln2g']), r3(params['ln2b'])
    bqkv, bo = r3(params['bqkv']), r3(params['bo'])
    b1, b2 = r3(params['b1']), r3(params['b2'])

    vmem_cap = 48 * 1024 * 1024

    wmap = lambda b, l: (l, 0, 0)      # per-layer weight blocks
    cmap = lambda b, l: (0, 0)         # layer-invariant params
    xmap = lambda b, l: (b, 0, 0)      # per-batch activation blocks

    # ---- pass 1: all transformer blocks + final LayerNorm ----
    xn = pl.pallas_call(
        functools.partial(blocks_kernel, num_heads=num_heads),
        out_shape=jax.ShapeDtypeStruct((B, T, D), jnp.float32),
        grid=(B, L),
        in_specs=[
            pl.BlockSpec((1, T, D), xmap),            # embeddings
            pl.BlockSpec((1, 1, D), wmap),            # ln1 gamma
            pl.BlockSpec((1, 1, D), wmap),            # ln1 beta
            pl.BlockSpec((1, D, 3 * D), wmap),        # wqkv
            pl.BlockSpec((1, 1, 3 * D), wmap),        # bqkv
            pl.BlockSpec((1, D, D), wmap),            # wo
            pl.BlockSpec((1, 1, D), wmap),            # bo
            pl.BlockSpec((1, 1, D), wmap),            # ln2 gamma
            pl.BlockSpec((1, 1, D), wmap),            # ln2 beta
            pl.BlockSpec((1, D, 4 * D), wmap),        # w1
            pl.BlockSpec((1, 1, 4 * D), wmap),        # b1
            pl.BlockSpec((1, 4 * D, D), wmap),        # w2
            pl.BlockSpec((1, 1, D), wmap),            # b2
            pl.BlockSpec((1, D), cmap),               # final LN gamma
            pl.BlockSpec((1, D), cmap),               # final LN beta
        ],
        out_specs=pl.BlockSpec((1, T, D), xmap),
        scratch_shapes=[pltpu.VMEM((T, D), jnp.float32)],
        compiler_params=pltpu.CompilerParams(
            dimension_semantics=("parallel", "arbitrary"),
            vmem_limit_bytes=vmem_cap),
    )(embeds, ln1g, ln1b, wqkv, bqkv, wo, bo, ln2g, ln2b,
      w1, b1, w2, b2, params['flng'], params['flnb'])

    # ---- vocab projection + softmax, tiled over a 128-padded vocab axis ----
    Vp = pl.cdiv(V, tile_v) * tile_v
    NV = Vp // tile_v
    wv_p = jnp.pad(params['wv'], ((0, 0), (0, Vp - V))).astype(jnp.bfloat16)
    # padded logits get a huge negative bias -> vanish under softmax
    bv_p = jnp.pad(params['bv'], ((0, 0), (0, Vp - V)), constant_values=-1e30)

    x_spec = pl.BlockSpec((1, T, D), lambda b, j: (b, 0, 0))
    wv_spec = pl.BlockSpec((D, tile_v), lambda b, j: (0, j))
    bv_spec = pl.BlockSpec((1, tile_v), lambda b, j: (0, j))
    ml_spec = pl.BlockSpec((1, T, 1), lambda b, j: (b, 0, 0))

    m, l = pl.pallas_call(
        vocab_stats_kernel,
        out_shape=(jax.ShapeDtypeStruct((B, T, 1), jnp.float32),
                   jax.ShapeDtypeStruct((B, T, 1), jnp.float32)),
        grid=(B, NV),
        in_specs=[x_spec, wv_spec, bv_spec],
        out_specs=(ml_spec, ml_spec),
        scratch_shapes=[pltpu.VMEM((T, 1), jnp.float32),
                        pltpu.VMEM((T, 1), jnp.float32)],
        compiler_params=pltpu.CompilerParams(
            dimension_semantics=("parallel", "arbitrary"),
            vmem_limit_bytes=vmem_cap),
    )(xn, wv_p, bv_p)

    probs_p = pl.pallas_call(
        vocab_probs_kernel,
        out_shape=jax.ShapeDtypeStruct((B, T, Vp), jnp.float32),
        grid=(B, NV),
        in_specs=[x_spec, wv_spec, bv_spec, ml_spec, ml_spec],
        out_specs=pl.BlockSpec((1, T, tile_v), lambda b, j: (b, 0, j)),
        compiler_params=pltpu.CompilerParams(
            dimension_semantics=("parallel", "parallel"),
            vmem_limit_bytes=vmem_cap),
    )(xn, wv_p, bv_p, m, l)

    return probs_p[:, :, :V]


if __name__ == "__main__":
    vocab_size = 64
    context_len = 16
    model_dim = 32
    num_blocks = 2
    num_heads = 4
    B, T = 2, 8

    key = jax.random.PRNGKey(0)
    k_ctx, k_par = jax.random.split(key)
    context = jax.random.randint(k_ctx, (B, T), 0, vocab_size, dtype=jnp.int32)
    params = init_params(k_par, vocab_size, context_len, model_dim,
                         num_blocks, num_heads)

    probs = gpt_forward(context, params, num_blocks=num_blocks,
                        num_heads=num_heads)
    probs = jax.block_until_ready(probs)

    assert probs.shape == (B, T, vocab_size)
    assert bool(jnp.all(jnp.isfinite(probs)))
    # each row is a (rounded) probability distribution
    assert bool(jnp.all(jnp.abs(jnp.sum(probs, axis=-1) - 1.0) < 1e-2))
    print("KERNEL_OK")
</pallas_src>

<mosaic_0001>
module attributes {stable_mosaic.version = 11 : i64} {
  func.func @blocks_kernel(%arg0: i32, %arg1: i32, %arg2: memref<1x8x32xf32, #tpu.memory_space<vmem>>, %arg3: memref<1x1x32xf32, #tpu.memory_space<vmem>>, %arg4: memref<1x1x32xf32, #tpu.memory_space<vmem>>, %arg5: memref<1x32x96xbf16, #tpu.memory_space<vmem>>, %arg6: memref<1x1x96xf32, #tpu.memory_space<vmem>>, %arg7: memref<1x32x32xbf16, #tpu.memory_space<vmem>>, %arg8: memref<1x1x32xf32, #tpu.memory_space<vmem>>, %arg9: memref<1x1x32xf32, #tpu.memory_space<vmem>>, %arg10: memref<1x1x32xf32, #tpu.memory_space<vmem>>, %arg11: memref<1x32x128xbf16, #tpu.memory_space<vmem>>, %arg12: memref<1x1x128xf32, #tpu.memory_space<vmem>>, %arg13: memref<1x128x32xbf16, #tpu.memory_space<vmem>>, %arg14: memref<1x1x32xf32, #tpu.memory_space<vmem>>, %arg15: memref<1x32xf32, #tpu.memory_space<vmem>>, %arg16: memref<1x32xf32, #tpu.memory_space<vmem>>, %arg17: memref<1x8x32xf32, #tpu.memory_space<vmem>>, %arg18: memref<8x32xf32, #tpu.memory_space<vmem>>) attributes {dimension_semantics = [#tpu.dimension_semantics<parallel>, #tpu.dimension_semantics<arbitrary>], iteration_bounds = array<i64: 2, 2>, scalar_prefetch = 0 : i64, scratch_operands = 1 : i64, tpu.core_type = #tpu.core_type<tc>, window_params = [{transform_indices = @transform_0, window_bounds = array<i64: 1, 8, 32>}, {transform_indices = @transform_1, window_bounds = array<i64: 1, 1, 32>}, {transform_indices = @transform_2, window_bounds = array<i64: 1, 1, 32>}, {transform_indices = @transform_3, window_bounds = array<i64: 1, 32, 96>}, {transform_indices = @transform_4, window_bounds = array<i64: 1, 1, 96>}, {transform_indices = @transform_5, window_bounds = array<i64: 1, 32, 32>}, {transform_indices = @transform_6, window_bounds = array<i64: 1, 1, 32>}, {transform_indices = @transform_7, window_bounds = array<i64: 1, 1, 32>}, {transform_indices = @transform_8, window_bounds = array<i64: 1, 1, 32>}, {transform_indices = @transform_9, window_bounds = array<i64: 1, 32, 128>}, {transform_indices = @transform_10, window_bounds = array<i64: 1, 1, 128>}, {transform_indices = @transform_11, window_bounds = array<i64: 1, 128, 32>}, {transform_indices = @transform_12, window_bounds = array<i64: 1, 1, 32>}, {pipeline_mode = #tpu.pipeline_mode<synchronous>, transform_indices = @transform_13, window_bounds = array<i64: 1, 32>}, {pipeline_mode = #tpu.pipeline_mode<synchronous>, transform_indices = @transform_14, window_bounds = array<i64: 1, 32>}, {transform_indices = @transform_15, window_bounds = array<i64: 1, 8, 32>}]} {
    %c0_i32 = arith.constant 0 : i32
    %0 = arith.cmpi eq, %arg1, %c0_i32 : i32
    %1 = arith.extui %0 : i1 to i32
    %c0_i32_0 = arith.constant 0 : i32
    %2 = arith.cmpi ne, %1, %c0_i32_0 : i32
    scf.if %2 {
      %c0_65 = arith.constant 0 : index
      %c0_66 = arith.constant 0 : index
      %c0_67 = arith.constant 0 : index
      %173 = vector.load %arg2[%c0_65, %c0_66, %c0_67] : memref<1x8x32xf32, #tpu.memory_space<vmem>>, vector<1x8x32xf32>
      %174 = vector.shape_cast %173 : vector<1x8x32xf32> to vector<8x32xf32>
      %c0_68 = arith.constant 0 : index
      %c0_69 = arith.constant 0 : index
      %175 = vector.load %arg18[%c0_68, %c0_69] : memref<8x32xf32, #tpu.memory_space<vmem>>, vector<8x32xf32>
      tpu.vector_store %arg18[%c0_68, %c0_69], %174 {strides = array<i32>} : memref<8x32xf32, #tpu.memory_space<vmem>>, vector<8x32xf32>,
    } else {
    }
    %c0 = arith.constant 0 : index
    %c0_1 = arith.constant 0 : index
    %3 = vector.load %arg18[%c0, %c0_1] : memref<8x32xf32, #tpu.memory_space<vmem>>, vector<8x32xf32>
    %4 = tpu.iota {dimensions = array<i32: 0>} : vector<8x8xi32>
    %5 = tpu.iota {dimensions = array<i32: 1>} : vector<8x8xi32>
    %6 = arith.cmpi sge, %4, %5 : vector<8x8xi32>
    %cst = arith.constant 0.000000e+00 : f32
    %cst_2 = arith.constant -1.000000e+30 : f32
    %7 = vector.broadcast %cst : f32 to vector<8x8xf32>
    %8 = vector.broadcast %cst_2 : f32 to vector<8x8xf32>
    %9 = arith.select %6, %7, %8 : vector<8x8xi1>, vector<8x8xf32>
    %c0_3 = arith.constant 0 : index
    %c0_4 = arith.constant 0 : index
    %c0_5 = arith.constant 0 : index
    %10 = vector.load %arg3[%c0_3, %c0_4, %c0_5] : memref<1x1x32xf32, #tpu.memory_space<vmem>>, vector<1x1x32xf32>
    %11 = vector.shape_cast %10 : vector<1x1x32xf32> to vector<1x32xf32>
    %c0_6 = arith.constant 0 : index
    %c0_7 = arith.constant 0 : index
    %c0_8 = arith.constant 0 : index
    %12 = vector.load %arg4[%c0_6, %c0_7, %c0_8] : memref<1x1x32xf32, #tpu.memory_space<vmem>>, vector<1x1x32xf32>
    %13 = vector.shape_cast %12 : vector<1x1x32xf32> to vector<1x32xf32>
    %cst_9 = arith.constant dense<0.000000e+00> : vector<8xf32>
    %14 = vector.multi_reduction <add>, %3, %cst_9 [1] : vector<8x32xf32> to vector<8xf32>
    %15 = vector.shape_cast %14 : vector<8xf32> to vector<8x1xf32>
    %cst_10 = arith.constant 3.200000e+01 : f32
    %16 = vector.broadcast %cst_10 : f32 to vector<8x1xf32>
    %17 = arith.divf %15, %16 : vector<8x1xf32>
    %18 = vector.broadcast %17 : vector<8x1xf32> to vector<8x32xf32>
    %19 = arith.subf %3, %18 : vector<8x32xf32>
    %20 = arith.mulf %19, %19 : vector<8x32xf32>
    %cst_11 = arith.constant dense<0.000000e+00> : vector<8xf32>
    %21 = vector.multi_reduction <add>, %20, %cst_11 [1] : vector<8x32xf32> to vector<8xf32>
    %22 = vector.shape_cast %21 : vector<8xf32> to vector<8x1xf32>
    %cst_12 = arith.constant 3.200000e+01 : f32
    %23 = vector.broadcast %cst_12 : f32 to vector<8x1xf32>
    %24 = arith.divf %22, %23 : vector<8x1xf32>
    %25 = vector.broadcast %17 : vector<8x1xf32> to vector<8x32xf32>
    %26 = arith.subf %3, %25 : vector<8x32xf32>
    %cst_13 = arith.constant 9.99999974E-6 : f32
    %27 = vector.broadcast %cst_13 : f32 to vector<8x1xf32>
    %28 = arith.addf %24, %27 : vector<8x1xf32>
    %29 = math.rsqrt %28 : vector<8x1xf32>
    %30 = vector.broadcast %29 : vector<8x1xf32> to vector<8x32xf32>
    %31 = arith.mulf %26, %30 : vector<8x32xf32>
    %32 = vector.broadcast %11 : vector<1x32xf32> to vector<8x32xf32>
    %33 = arith.mulf %31, %32 : vector<8x32xf32>
    %34 = vector.broadcast %13 : vector<1x32xf32> to vector<8x32xf32>
    %35 = arith.addf %33, %34 : vector<8x32xf32>
    %36 = arith.truncf %35 : vector<8x32xf32> to vector<8x32xbf16>
    %c0_14 = arith.constant 0 : index
    %c0_15 = arith.constant 0 : index
    %c0_16 = arith.constant 0 : index
    %37 = vector.load %arg5[%c0_14, %c0_15, %c0_16] : memref<1x32x96xbf16, #tpu.memory_space<vmem>>, vector<1x32x96xbf16>
    %38 = vector.shape_cast %37 : vector<1x32x96xbf16> to vector<32x96xbf16>
    %cst_17 = arith.constant dense<0.000000e+00> : vector<8x96xf32>
    %39 = tpu.matmul %36, %38, %cst_17 {dimension_numbers = #tpu.dot_dimension_numbers<[1], [0], [0], [1], [0, 0, 1, 1], [], []>} : vector<8x32xbf16>, vector<32x96xbf16>, vector<8x96xf32> -> vector<8x96xf32>
    %c0_18 = arith.constant 0 : index
    %c0_19 = arith.constant 0 : index
    %c0_20 = arith.constant 0 : index
    %40 = vector.load %arg6[%c0_18, %c0_19, %c0_20] : memref<1x1x96xf32, #tpu.memory_space<vmem>>, vector<1x1x96xf32>
    %41 = vector.shape_cast %40 : vector<1x1x96xf32> to vector<1x96xf32>
    %42 = vector.broadcast %41 : vector<1x96xf32> to vector<8x96xf32>
    %43 = arith.addf %39, %42 : vector<8x96xf32>
    %44 = vector.extract_strided_slice %43 {offsets = [0, 0], sizes = [8, 32], strides = [1, 1]} : vector<8x96xf32> to vector<8x32xf32>
    %45 = vector.extract_strided_slice %44 {offsets = [0, 0], sizes = [8, 8], strides = [1, 1]} : vector<8x32xf32> to vector<8x8xf32>
    %46 = vector.extract_strided_slice %44 {offsets = [0, 8], sizes = [8, 8], strides = [1, 1]} : vector<8x32xf32> to vector<8x8xf32>
    %47 = vector.extract_strided_slice %44 {offsets = [0, 16], sizes = [8, 8], strides = [1, 1]} : vector<8x32xf32> to vector<8x8xf32>
    %48 = vector.extract_strided_slice %44 {offsets = [0, 24], sizes = [8, 8], strides = [1, 1]} : vector<8x32xf32> to vector<8x8xf32>
    %49 = vector.shape_cast %45 : vector<8x8xf32> to vector<1x8x8xf32>
    %50 = vector.shape_cast %46 : vector<8x8xf32> to vector<1x8x8xf32>
    %51 = vector.shape_cast %47 : vector<8x8xf32> to vector<1x8x8xf32>
    %52 = vector.shape_cast %48 : vector<8x8xf32> to vector<1x8x8xf32>
    %53 = tpu.concatenate %49, %50, %51, %52 in 0 : vector<1x8x8xf32>, vector<1x8x8xf32>, vector<1x8x8xf32>, vector<1x8x8xf32> -> vector<4x8x8xf32>
    %54 = arith.truncf %53 : vector<4x8x8xf32> to vector<4x8x8xbf16>
    %55 = vector.extract_strided_slice %43 {offsets = [0, 32], sizes = [8, 32], strides = [1, 1]} : vector<8x96xf32> to vector<8x32xf32>
    %56 = vector.extract_strided_slice %55 {offsets = [0, 0], sizes = [8, 8], strides = [1, 1]} : vector<8x32xf32> to vector<8x8xf32>
    %57 = vector.extract_strided_slice %55 {offsets = [0, 8], sizes = [8, 8], strides = [1, 1]} : vector<8x32xf32> to vector<8x8xf32>
    %58 = vector.extract_strided_slice %55 {offsets = [0, 16], sizes = [8, 8], strides = [1, 1]} : vector<8x32xf32> to vector<8x8xf32>
    %59 = vector.extract_strided_slice %55 {offsets = [0, 24], sizes = [8, 8], strides = [1, 1]} : vector<8x32xf32> to vector<8x8xf32>
    %60 = vector.shape_cast %56 : vector<8x8xf32> to vector<1x8x8xf32>
    %61 = vector.shape_cast %57 : vector<8x8xf32> to vector<1x8x8xf32>
    %62 = vector.shape_cast %58 : vector<8x8xf32> to vector<1x8x8xf32>
    %63 = vector.shape_cast %59 : vector<8x8xf32> to vector<1x8x8xf32>
    %64 = tpu.concatenate %60, %61, %62, %63 in 0 : vector<1x8x8xf32>, vector<1x8x8xf32>, vector<1x8x8xf32>, vector<1x8x8xf32> -> vector<4x8x8xf32>
    %65 = arith.truncf %64 : vector<4x8x8xf32> to vector<4x8x8xbf16>
    %66 = vector.extract_strided_slice %43 {offsets = [0, 64], sizes = [8, 32], strides = [1, 1]} : vector<8x96xf32> to vector<8x32xf32>
    %67 = vector.extract_strided_slice %66 {offsets = [0, 0], sizes = [8, 8], strides = [1, 1]} : vector<8x32xf32> to vector<8x8xf32>
    %68 = vector.extract_strided_slice %66 {offsets = [0, 8], sizes = [8, 8], strides = [1, 1]} : vector<8x32xf32> to vector<8x8xf32>
    %69 = vector.extract_strided_slice %66 {offsets = [0, 16], sizes = [8, 8], strides = [1, 1]} : vector<8x32xf32> to vector<8x8xf32>
    %70 = vector.extract_strided_slice %66 {offsets = [0, 24], sizes = [8, 8], strides = [1, 1]} : vector<8x32xf32> to vector<8x8xf32>
    %71 = vector.shape_cast %67 : vector<8x8xf32> to vector<1x8x8xf32>
    %72 = vector.shape_cast %68 : vector<8x8xf32> to vector<1x8x8xf32>
    %73 = vector.shape_cast %69 : vector<8x8xf32> to vector<1x8x8xf32>
    %74 = vector.shape_cast %70 : vector<8x8xf32> to vector<1x8x8xf32>
    %75 = tpu.concatenate %71, %72, %73, %74 in 0 : vector<1x8x8xf32>, vector<1x8x8xf32>, vector<1x8x8xf32>, vector<1x8x8xf32> -> vector<4x8x8xf32>
    %76 = arith.truncf %75 : vector<4x8x8xf32> to vector<4x8x8xbf16>
    "tpu.trace_start"() <{level = 10 : i32, message = "hqd,hkd->hqk"}> : () -> ()
    %cst_21 = arith.constant dense<0.000000e+00> : vector<4x8x8xf32>
    %77 = tpu.matmul %54, %65, %cst_21 {dimension_numbers = #tpu.dot_dimension_numbers<[2], [2], [1], [1], [0, 0, 0, 1, 1, 1], [0], [0]>} : vector<4x8x8xbf16>, vector<4x8x8xbf16>, vector<4x8x8xf32> -> vector<4x8x8xf32>
    "tpu.trace_stop"() : () -> ()
    %cst_22 = arith.constant 0.353553385 : f32
    %78 = vector.broadcast %cst_22 : f32 to vector<4x8x8xf32>
    %79 = arith.mulf %77, %78 : vector<4x8x8xf32>
    %80 = vector.shape_cast %9 : vector<8x8xf32> to vector<1x8x8xf32>
    %81 = vector.broadcast %80 : vector<1x8x8xf32> to vector<4x8x8xf32>
    %82 = arith.addf %79, %81 : vector<4x8x8xf32>
    %cst_23 = arith.constant dense<0xFF800000> : vector<4x8xf32>
    %83 = vector.multi_reduction <maximumf>, %82, %cst_23 [2] : vector<4x8x8xf32> to vector<4x8xf32>
    %84 = vector.shape_cast %83 : vector<4x8xf32> to vector<4x8x1xf32>
    %85 = vector.broadcast %84 : vector<4x8x1xf32> to vector<4x8x8xf32>
    %86 = arith.subf %82, %85 : vector<4x8x8xf32>
    %87 = math.exp %86 : vector<4x8x8xf32>
    %cst_24 = arith.constant dense<0.000000e+00> : vector<4x8xf32>
    %88 = vector.multi_reduction <add>, %87, %cst_24 [2] : vector<4x8x8xf32> to vector<4x8xf32>
    %89 = vector.shape_cast %88 : vector<4x8xf32> to vector<4x8x1xf32>
    %90 = tpu.reciprocal %89 {approx = true} : vector<4x8x1xf32> -> vector<4x8x1xf32>
    %91 = vector.broadcast %90 : vector<4x8x1xf32> to vector<4x8x8xf32>
    %92 = arith.mulf %87, %91 : vector<4x8x8xf32>
    %93 = arith.truncf %92 : vector<4x8x8xf32> to vector<4x8x8xbf16>
    "tpu.trace_start"() <{level = 10 : i32, message = "hqk,hkd->hqd"}> : () -> ()
    %cst_25 = arith.constant dense<0.000000e+00> : vector<4x8x8xf32>
    %94 = tpu.matmul %93, %76, %cst_25 {dimension_numbers = #tpu.dot_dimension_numbers<[2], [1], [1], [2], [0, 0, 0, 1, 1, 2], [0], [0]>} : vector<4x8x8xbf16>, vector<4x8x8xbf16>, vector<4x8x8xf32> -> vector<4x8x8xf32>
    "tpu.trace_stop"() : () -> ()
    %95 = vector.extract_strided_slice %94 {offsets = [0, 0, 0], sizes = [1, 8, 8], strides = [1, 1, 1]} : vector<4x8x8xf32> to vector<1x8x8xf32>
    %96 = vector.shape_cast %95 : vector<1x8x8xf32> to vector<8x8xf32>
    %97 = vector.extract_strided_slice %94 {offsets = [1, 0, 0], sizes = [1, 8, 8], strides = [1, 1, 1]} : vector<4x8x8xf32> to vector<1x8x8xf32>
    %98 = vector.shape_cast %97 : vector<1x8x8xf32> to vector<8x8xf32>
    %99 = vector.extract_strided_slice %94 {offsets = [2, 0, 0], sizes = [1, 8, 8], strides = [1, 1, 1]} : vector<4x8x8xf32> to vector<1x8x8xf32>
    %100 = vector.shape_cast %99 : vector<1x8x8xf32> to vector<8x8xf32>
    %101 = vector.extract_strided_slice %94 {offsets = [3, 0, 0], sizes = [1, 8, 8], strides = [1, 1, 1]} : vector<4x8x8xf32> to vector<1x8x8xf32>
    %102 = vector.shape_cast %101 : vector<1x8x8xf32> to vector<8x8xf32>
    %103 = tpu.concatenate %96, %98, %100, %102 in 1 : vector<8x8xf32>, vector<8x8xf32>, vector<8x8xf32>, vector<8x8xf32> -> vector<8x32xf32>
    %104 = arith.truncf %103 : vector<8x32xf32> to vector<8x32xbf16>
    %c0_26 = arith.constant 0 : index
    %c0_27 = arith.constant 0 : index
    %c0_28 = arith.constant 0 : index
    %105 = vector.load %arg7[%c0_26, %c0_27, %c0_28] : memref<1x32x32xbf16, #tpu.memory_space<vmem>>, vector<1x32x32xbf16>
    %106 = vector.shape_cast %105 : vector<1x32x32xbf16> to vector<32x32xbf16>
    %cst_29 = arith.constant dense<0.000000e+00> : vector<8x32xf32>
    %107 = tpu.matmul %104, %106, %cst_29 {dimension_numbers = #tpu.dot_dimension_numbers<[1], [0], [0], [1], [0, 0, 1, 1], [], []>} : vector<8x32xbf16>, vector<32x32xbf16>, vector<8x32xf32> -> vector<8x32xf32>
    %c0_30 = arith.constant 0 : index
    %c0_31 = arith.constant 0 : index
    %c0_32 = arith.constant 0 : index
    %108 = vector.load %arg8[%c0_30, %c0_31, %c0_32] : memref<1x1x32xf32, #tpu.memory_space<vmem>>, vector<1x1x32xf32>
    %109 = vector.shape_cast %108 : vector<1x1x32xf32> to vector<1x32xf32>
    %110 = vector.broadcast %109 : vector<1x32xf32> to vector<8x32xf32>
    %111 = arith.addf %107, %110 : vector<8x32xf32>
    %112 = arith.addf %3, %111 : vector<8x32xf32>
    %c0_33 = arith.constant 0 : index
    %c0_34 = arith.constant 0 : index
    %c0_35 = arith.constant 0 : index
    %113 = vector.load %arg9[%c0_33, %c0_34, %c0_35] : memref<1x1x32xf32, #tpu.memory_space<vmem>>, vector<1x1x32xf32>
    %114 = vector.shape_cast %113 : vector<1x1x32xf32> to vector<1x32xf32>
    %c0_36 = arith.constant 0 : index
    %c0_37 = arith.constant 0 : index
    %c0_38 = arith.constant 0 : index
    %115 = vector.load %arg10[%c0_36, %c0_37, %c0_38] : memref<1x1x32xf32, #tpu.memory_space<vmem>>, vector<1x1x32xf32>
    %116 = vector.shape_cast %115 : vector<1x1x32xf32> to vector<1x32xf32>
    %cst_39 = arith.constant dense<0.000000e+00> : vector<8xf32>
    %117 = vector.multi_reduction <add>, %112, %cst_39 [1] : vector<8x32xf32> to vector<8xf32>
    %118 = vector.shape_cast %117 : vector<8xf32> to vector<8x1xf32>
    %cst_40 = arith.constant 3.200000e+01 : f32
    %119 = vector.broadcast %cst_40 : f32 to vector<8x1xf32>
    %120 = arith.divf %118, %119 : vector<8x1xf32>
    %121 = vector.broadcast %120 : vector<8x1xf32> to vector<8x32xf32>
    %122 = arith.subf %112, %121 : vector<8x32xf32>
    %123 = arith.mulf %122, %122 : vector<8x32xf32>
    %cst_41 = arith.constant dense<0.000000e+00> : vector<8xf32>
    %124 = vector.multi_reduction <add>, %123, %cst_41 [1] : vector<8x32xf32> to vector<8xf32>
    %125 = vector.shape_cast %124 : vector<8xf32> to vector<8x1xf32>
    %cst_42 = arith.constant 3.200000e+01 : f32
    %126 = vector.broadcast %cst_42 : f32 to vector<8x1xf32>
    %127 = arith.divf %125, %126 : vector<8x1xf32>
    %128 = vector.broadcast %120 : vector<8x1xf32> to vector<8x32xf32>
    %129 = arith.subf %112, %128 : vector<8x32xf32>
    %cst_43 = arith.constant 9.99999974E-6 : f32
    %130 = vector.broadcast %cst_43 : f32 to vector<8x1xf32>
    %131 = arith.addf %127, %130 : vector<8x1xf32>
    %132 = math.rsqrt %131 : vector<8x1xf32>
    %133 = vector.broadcast %132 : vector<8x1xf32> to vector<8x32xf32>
    %134 = arith.mulf %129, %133 : vector<8x32xf32>
    %135 = vector.broadcast %114 : vector<1x32xf32> to vector<8x32xf32>
    %136 = arith.mulf %134, %135 : vector<8x32xf32>
    %137 = vector.broadcast %116 : vector<1x32xf32> to vector<8x32xf32>
    %138 = arith.addf %136, %137 : vector<8x32xf32>
    %139 = arith.truncf %138 : vector<8x32xf32> to vector<8x32xbf16>
    %c0_44 = arith.constant 0 : index
    %c0_45 = arith.constant 0 : index
    %c0_46 = arith.constant 0 : index
    %140 = vector.load %arg11[%c0_44, %c0_45, %c0_46] : memref<1x32x128xbf16, #tpu.memory_space<vmem>>, vector<1x32x128xbf16>
    %141 = vector.shape_cast %140 : vector<1x32x128xbf16> to vector<32x128xbf16>
    %cst_47 = arith.constant dense<0.000000e+00> : vector<8x128xf32>
    %142 = tpu.matmul %139, %141, %cst_47 {dimension_numbers = #tpu.dot_dimension_numbers<[1], [0], [0], [1], [0, 0, 1, 1], [], []>} : vector<8x32xbf16>, vector<32x128xbf16>, vector<8x128xf32> -> vector<8x128xf32>
    %c0_48 = arith.constant 0 : index
    %c0_49 = arith.constant 0 : index
    %c0_50 = arith.constant 0 : index
    %143 = vector.load %arg12[%c0_48, %c0_49, %c0_50] : memref<1x1x128xf32, #tpu.memory_space<vmem>>, vector<1x1x128xf32>
    %144 = vector.shape_cast %143 : vector<1x1x128xf32> to vector<1x128xf32>
    %145 = vector.broadcast %144 : vector<1x128xf32> to vector<8x128xf32>
    %146 = arith.addf %142, %145 : vector<8x128xf32>
    %147 = arith.mulf %146, %146 : vector<8x128xf32>
    %148 = arith.mulf %146, %147 : vector<8x128xf32>
    %cst_51 = arith.constant 4.471500e-02 : f32
    %149 = vector.broadcast %cst_51 : f32 to vector<8x128xf32>
    %150 = arith.mulf %149, %148 : vector<8x128xf32>
    %151 = arith.addf %146, %150 : vector<8x128xf32>
    %cst_52 = arith.constant 0.797884583 : f32
    %152 = vector.broadcast %cst_52 : f32 to vector<8x128xf32>
    %153 = arith.mulf %152, %151 : vector<8x128xf32>
    %154 = math.tanh %153 : vector<8x128xf32>
    %cst_53 = arith.constant 1.000000e+00 : f32
    %155 = vector.broadcast %cst_53 : f32 to vector<8x128xf32>
    %156 = arith.addf %155, %154 : vector<8x128xf32>
    %cst_54 = arith.constant 5.000000e-01 : f32
    %157 = vector.broadcast %cst_54 : f32 to vector<8x128xf32>
    %158 = arith.mulf %157, %156 : vector<8x128xf32>
    %159 = arith.mulf %146, %158 : vector<8x128xf32>
    %160 = arith.truncf %159 : vector<8x128xf32> to vector<8x128xbf16>
    %c0_55 = arith.constant 0 : index
    %c0_56 = arith.constant 0 : index
    %c0_57 = arith.constant 0 : index
    %161 = vector.load %arg13[%c0_55, %c0_56, %c0_57] : memref<1x128x32xbf16, #tpu.memory_space<vmem>>, vector<1x128x32xbf16>
    %162 = vector.shape_cast %161 : vector<1x128x32xbf16> to vector<128x32xbf16>
    %cst_58 = arith.constant dense<0.000000e+00> : vector<8x32xf32>
    %163 = tpu.matmul %160, %162, %cst_58 {dimension_numbers = #tpu.dot_dimension_numbers<[1], [0], [0], [1], [0, 0, 1, 1], [], []>} : vector<8x128xbf16>, vector<128x32xbf16>, vector<8x32xf32> -> vector<8x32xf32>
    %c0_59 = arith.constant 0 : index
    %c0_60 = arith.constant 0 : index
    %c0_61 = arith.constant 0 : index
    %164 = vector.load %arg14[%c0_59, %c0_60, %c0_61] : memref<1x1x32xf32, #tpu.memory_space<vmem>>, vector<1x1x32xf32>
    %165 = vector.shape_cast %164 : vector<1x1x32xf32> to vector<1x32xf32>
    %166 = vector.broadcast %165 : vector<1x32xf32> to vector<8x32xf32>
    %167 = arith.addf %163, %166 : vector<8x32xf32>
    %168 = arith.addf %112, %167 : vector<8x32xf32>
    %c0_62 = arith.constant 0 : index
    %c0_63 = arith.constant 0 : index
    %169 = vector.load %arg18[%c0_62, %c0_63] : memref<8x32xf32, #tpu.memory_space<vmem>>, vector<8x32xf32>
    tpu.vector_store %arg18[%c0_62, %c0_63], %168 {strides = array<i32>} : memref<8x32xf32, #tpu.memory_space<vmem>>, vector<8x32xf32>,
    %c1_i32 = arith.constant 1 : i32
    %170 = arith.cmpi eq, %arg1, %c1_i32 : i32
    %171 = arith.extui %170 : i1 to i32
    %c0_i32_64 = arith.constant 0 : i32
    %172 = arith.cmpi ne, %171, %c0_i32_64 : i32
    scf.if %172 {
      %c0_65 = arith.constant 0 : index
      %c0_66 = arith.constant 0 : index
      %173 = vector.load %arg15[%c0_65, %c0_66] : memref<1x32xf32, #tpu.memory_space<vmem>>, vector<1x32xf32>
      %c0_67 = arith.constant 0 : index
      %c0_68 = arith.constant 0 : index
      %174 = vector.load %arg16[%c0_67, %c0_68] : memref<1x32xf32, #tpu.memory_space<vmem>>, vector<1x32xf32>
      %cst_69 = arith.constant dense<0.000000e+00> : vector<8xf32>
      %175 = vector.multi_reduction <add>, %168, %cst_69 [1] : vector<8x32xf32> to vector<8xf32>
      %176 = vector.shape_cast %175 : vector<8xf32> to vector<8x1xf32>
      %cst_70 = arith.constant 3.200000e+01 : f32
      %177 = vector.broadcast %cst_70 : f32 to vector<8x1xf32>
      %178 = arith.divf %176, %177 : vector<8x1xf32>
      %179 = vector.broadcast %178 : vector<8x1xf32> to vector<8x32xf32>
      %180 = arith.subf %168, %179 : vector<8x32xf32>
      %181 = arith.mulf %180, %180 : vector<8x32xf32>
      %cst_71 = arith.constant dense<0.000000e+00> : vector<8xf32>
      %182 = vector.multi_reduction <add>, %181, %cst_71 [1] : vector<8x32xf32> to vector<8xf32>
      %183 = vector.shape_cast %182 : vector<8xf32> to vector<8x1xf32>
      %cst_72 = arith.constant 3.200000e+01 : f32
      %184 = vector.broadcast %cst_72 : f32 to vector<8x1xf32>
      %185 = arith.divf %183, %184 : vector<8x1xf32>
      %186 = vector.broadcast %178 : vector<8x1xf32> to vector<8x32xf32>
      %187 = arith.subf %168, %186 : vector<8x32xf32>
      %cst_73 = arith.constant 9.99999974E-6 : f32
      %188 = vector.broadcast %cst_73 : f32 to vector<8x1xf32>
      %189 = arith.addf %185, %188 : vector<8x1xf32>
      %190 = math.rsqrt %189 : vector<8x1xf32>
      %191 = vector.broadcast %190 : vector<8x1xf32> to vector<8x32xf32>
      %192 = arith.mulf %187, %191 : vector<8x32xf32>
      %193 = vector.broadcast %173 : vector<1x32xf32> to vector<8x32xf32>
      %194 = arith.mulf %192, %193 : vector<8x32xf32>
      %195 = vector.broadcast %174 : vector<1x32xf32> to vector<8x32xf32>
      %196 = arith.addf %194, %195 : vector<8x32xf32>
      %c0_74 = arith.constant 0 : index
      %c0_75 = arith.constant 0 : index
      %c0_76 = arith.constant 0 : index
      %197 = vector.load %arg17[%c0_74, %c0_75, %c0_76] : memref<1x8x32xf32, #tpu.memory_space<vmem>>, vector<1x8x32xf32>
      %198 = vector.shape_cast %197 : vector<1x8x32xf32> to vector<8x32xf32>
      %199 = vector.shape_cast %196 : vector<8x32xf32> to vector<1x8x32xf32>
      tpu.vector_store %arg17[%c0_74, %c0_75, %c0_76], %199 {strides = array<i32>} : memref<1x8x32xf32, #tpu.memory_space<vmem>>, vector<1x8x32xf32>,
    } else {
    }
    return
  }
  func.func @transform_0(%arg0: i32, %arg1: i32) -> (i32, i32, i32) {
    %c0_i32 = arith.constant 0 : i32
    %c0_i32_0 = arith.constant 0 : i32
    %c0_i32_1 = arith.constant 0 : i32
    return %arg0, %c0_i32, %c0_i32_0 : i32, i32, i32
  }
  func.func @transform_1(%arg0: i32, %arg1: i32) -> (i32, i32, i32) {
    %c0_i32 = arith.constant 0 : i32
    %c0_i32_0 = arith.constant 0 : i32
    %c0_i32_1 = arith.constant 0 : i32
    return %arg1, %c0_i32, %c0_i32_0 : i32, i32, i32
  }
  func.func @transform_2(%arg0: i32, %arg1: i32) -> (i32, i32, i32) {
    %c0_i32 = arith.constant 0 : i32
    %c0_i32_0 = arith.constant 0 : i32
    %c0_i32_1 = arith.constant 0 : i32
    return %arg1, %c0_i32, %c0_i32_0 : i32, i32, i32
  }
  func.func @transform_3(%arg0: i32, %arg1: i32) -> (i32, i32, i32) {
    %c0_i32 = arith.constant 0 : i32
    %c0_i32_0 = arith.constant 0 : i32
    %c0_i32_1 = arith.constant 0 : i32
    return %arg1, %c0_i32, %c0_i32_0 : i32, i32, i32
  }
  func.func @transform_4(%arg0: i32, %arg1: i32) -> (i32, i32, i32) {
    %c0_i32 = arith.constant 0 : i32
    %c0_i32_0 = arith.constant 0 : i32
    %c0_i32_1 = arith.constant 0 : i32
    return %arg1, %c0_i32, %c0_i32_0 : i32, i32, i32
  }
  func.func @transform_5(%arg0: i32, %arg1: i32) -> (i32, i32, i32) {
    %c0_i32 = arith.constant 0 : i32
    %c0_i32_0 = arith.constant 0 : i32
    %c0_i32_1 = arith.constant 0 : i32
    return %arg1, %c0_i32, %c0_i32_0 : i32, i32, i32
  }
  func.func @transform_6(%arg0: i32, %arg1: i32) -> (i32, i32, i32) {
    %c0_i32 = arith.constant 0 : i32
    %c0_i32_0 = arith.constant 0 : i32
    %c0_i32_1 = arith.constant 0 : i32
    return %arg1, %c0_i32, %c0_i32_0 : i32, i32, i32
  }
  func.func @transform_7(%arg0: i32, %arg1: i32) -> (i32, i32, i32) {
    %c0_i32 = arith.constant 0 : i32
    %c0_i32_0 = arith.constant 0 : i32
    %c0_i32_1 = arith.constant 0 : i32
    return %arg1, %c0_i32, %c0_i32_0 : i32, i32, i32
  }
  func.func @transform_8(%arg0: i32, %arg1: i32) -> (i32, i32, i32) {
    %c0_i32 = arith.constant 0 : i32
    %c0_i32_0 = arith.constant 0 : i32
    %c0_i32_1 = arith.constant 0 : i32
    return %arg1, %c0_i32, %c0_i32_0 : i32, i32, i32
  }
  func.func @transform_9(%arg0: i32, %arg1: i32) -> (i32, i32, i32) {
    %c0_i32 = arith.constant 0 : i32
    %c0_i32_0 = arith.constant 0 : i32
    %c0_i32_1 = arith.constant 0 : i32
    return %arg1, %c0_i32, %c0_i32_0 : i32, i32, i32
  }
  func.func @transform_10(%arg0: i32, %arg1: i32) -> (i32, i32, i32) {
    %c0_i32 = arith.constant 0 : i32
    %c0_i32_0 = arith.constant 0 : i32
    %c0_i32_1 = arith.constant 0 : i32
    return %arg1, %c0_i32, %c0_i32_0 : i32, i32, i32
  }
  func.func @transform_11(%arg0: i32, %arg1: i32) -> (i32, i32, i32) {
    %c0_i32 = arith.constant 0 : i32
    %c0_i32_0 = arith.constant 0 : i32
    %c0_i32_1 = arith.constant 0 : i32
    return %arg1, %c0_i32, %c0_i32_0 : i32, i32, i32
  }
  func.func @transform_12(%arg0: i32, %arg1: i32) -> (i32, i32, i32) {
    %c0_i32 = arith.constant 0 : i32
    %c0_i32_0 = arith.constant 0 : i32
    %c0_i32_1 = arith.constant 0 : i32
    return %arg1, %c0_i32, %c0_i32_0 : i32, i32, i32
  }
  func.func @transform_13(%arg0: i32, %arg1: i32) -> (i32, i32) {
    %c0_i32 = arith.constant 0 : i32
    %c0_i32_0 = arith.constant 0 : i32
    %c0_i32_1 = arith.constant 0 : i32
    return %c0_i32, %c0_i32_0 : i32, i32
  }
  func.func @transform_14(%arg0: i32, %arg1: i32) -> (i32, i32) {
    %c0_i32 = arith.constant 0 : i32
    %c0_i32_0 = arith.constant 0 : i32
    %c0_i32_1 = arith.constant 0 : i32
    return %c0_i32, %c0_i32_0 : i32, i32
  }
  func.func @transform_15(%arg0: i32, %arg1: i32) -> (i32, i32, i32) {
    %c0_i32 = arith.constant 0 : i32
    %c0_i32_0 = arith.constant 0 : i32
    %c0_i32_1 = arith.constant 0 : i32
    return %arg0, %c0_i32, %c0_i32_0 : i32, i32, i32
  }
}

</mosaic_0001>

<bundles_post_ra>
// kernel: tpu_custom_call.1
= control target key start
LH: loop header
LB: loop body
LE: loop exit
PB: predicated region body
PF: predicated region fallthrough
CT: control target
= control target key end

     0   :  { %s2676_s0 = inlined_call_operand.vmem [shape: f32[2,8,32], index: 0, kind: input, shape index: {}]   ;;  %s2677_s1 = inlined_call_operand.vmem [shape: f32[2,1,32], index: 1, kind: input, shape index: {}]   ;;  %s2678_s2 = inlined_call_operand.vmem [shape: f32[2,1,32], index: 2, kind: input, shape index: {}]   ;;  %s2679_s3 = inlined_call_operand.vmem [shape: bf16[2,32,96], index: 3, kind: input, shape index: {}]   ;;  %s2680_s4 = inlined_call_operand.vmem [shape: f32[2,1,96], index: 4, kind: input, shape index: {}]   ;;  %s2681_s5 = inlined_call_operand.vmem [shape: bf16[2,32,32], index: 5, kind: input, shape index: {}]   ;;  %s2682_s6 = inlined_call_operand.vmem [shape: f32[2,1,32], index: 6, kind: input, shape index: {}]   ;;  %s2683_s7 = inlined_call_operand.vmem [shape: f32[2,1,32], index: 7, kind: input, shape index: {}]   ;;  %s2684_s8 = inlined_call_operand.vmem [shape: f32[2,1,32], index: 8, kind: input, shape index: {}]   ;;  %s2685_s9 = inlined_call_operand.vmem [shape: bf16[2,32,128], index: 9, kind: input, shape index: {}]   ;;  %s2686_s10 = inlined_call_operand.vmem [shape: f32[2,1,128], index: 10, kind: input, shape index: {}]   ;;  %s2687_s11 = inlined_call_operand.vmem [shape: bf16[2,128,32], index: 11, kind: input, shape index: {}]   ;;  %s2688_s12 = inlined_call_operand.vmem [shape: f32[2,1,32], index: 12, kind: input, shape index: {}]   ;;  %s2689_s13 = inlined_call_operand.vmem [shape: f32[1,32], index: 13, kind: input, shape index: {}]   ;;  %s2690_s14 = inlined_call_operand.vmem [shape: f32[1,32], index: 14, kind: input, shape index: {}]   ;;  %s2691_s15 = inlined_call_operand.hbm [shape: f32[2,8,32], index: 15, kind: output, shape index: {}]  }
   0x1   :  { %2707 = sst [smem:[#allocation19_spill]] %s2676_s0 }
   0x2   :  { %2708 = sst [smem:[#allocation20_spill]] %s2678_s2 }
   0x3   :  { %2709 = sst [smem:[#allocation21_spill]] %s2679_s3 }
   0x4   :  { %2710 = sst [smem:[#allocation22_spill]] %s2681_s5 }
   0x5   :  { %2711 = sst [smem:[#allocation23_spill]] %s2689_s13 }
   0x6   :  { %2712 = sst [smem:[#allocation24_spill]] %s2690_s14 }
   0x7   :  { %2713 = sst [smem:[#allocation25_spill]] %s2691_s15 }
   0x8   :  { %20 = vsyncpa [#allocation4], 0 }
   0x9   :  { %22 = vsyncpa [#allocation4 + $0x1], 0  ;;  %s2303_s18 = smov 0   ;;  %s2305_s19 = smov 0  }
   0xa   :  { %s2307_s20 = smov 0   ;;  %s2309_s21 = smov 0  }
   0xb   :  { %s2311_s22 = smov 0   ;;  %s2313_s23 = smov 0  }
   0xc   :  { %s2315_s24 = smov 0   ;;  %s2317_s25 = smov 0  }
   0xd LB: > { %2714 = sst [smem:[#allocation6_spill]] %s2181_s18  ;;  %s1809_s26 = sadd.s32 4294967295, %s2209_s25   ;;  %s2209_s25 = sphi %s2317_s25, %s28_s25   ;;  %s2205_s24 = sphi %s2315_s24, %s2757_s24   ;;  %s2201_s23 = sphi %s2313_s23, %s2756_s23   ;;  %s2197_s22 = sphi %s2311_s22, %s2755_s22   ;;  %s2193_s21 = sphi %s2309_s21, %s2754_s21   ;;  %s2189_s20 = sphi %s2307_s20, %s2753_s20   ;;  %s2185_s19 = sphi %s2305_s19, %s2752_s19   ;;  %s2181_s18 = sphi %s2303_s18, %s2751_s18  }
   0xe   : > { %2715 = sst [smem:[#allocation7_spill]] %s2185_s19  ;;  %s1810_s27 = sadd.s32 4294967294, %s2209_s25  }
   0xf   : > { %2716 = sst [smem:[#allocation8_spill]] %s2189_s20  ;;  %s37_s28 = sadd.s32 1, %s2201_s23 }
  0x10   : > { %2717 = sst [smem:[#allocation9_spill]] %s2193_s21  ;;  %p38_p0 = scmp.ge.s32.totalorder %s37_s28, 2 }
  0x11   : > { %2718 = sst [smem:[#allocation10_spill]] %s2197_s22  ;;  %s40_s29 = sadd.s32 1, %s2205_s24 }
  0x12   : > { %2719 = sst [smem:[#allocation11_spill]] %s2201_s23  ;;  %p437_p1 = scmp.ne.s32.totalorder %s2189_s20, %s2185_s19 }
  0x13   : > { %2720 = sst [smem:[#allocation12_spill]] %s2205_s24  ;;  %p438_p2 = scmp.eq.s32.totalorder %s1809_s26, 3 }
  0x14   : > { %2721 = sst [smem:[#allocation13_spill]] %s2209_s25  ;;  %s2759_s28 = smov (%p38_p0, %s37_s28), 0 }
  0x15   : > { %2722 = sst [smem:[#allocation14_spill]] %s2759_s28  ;;  %s2761_s29 = smov (!%p38_p0, %s40_s29), %s2205_s24 }
  0x16   : > { %p2352_p3 = por %p438_p2, %p437_p1  ;;  %p443_p4 = scmp.ne.s32.totalorder %s2185_s19, %s2181_s18 }
  0x17   : > { %p42_p5 = scmp.ge.s32.totalorder %s2761_s29, 2  ;;  %p444_p6 = scmp.eq.s32.totalorder %s1810_s27, 3 }
  0x18   : > { %s2723_s30 = scalar_select %p2352_p3, 1, 0 }
  0x19   : > { %p1813_p7 = scmp.ge.s32.totalorder %s2209_s25, 1  ;;  %p555_p8 = scmp.lt.s32.totalorder %s2209_s25, 5 }
  0x1a   : > { %2724 = sst [smem:[#allocation15_spill]] %s2723_s30  ;;  %s2763_s29 = smov (%p42_p5, %s2761_s29), 0 }
  0x1b   : > { %2725 = sst [smem:[#allocation16_spill]] %s2763_s29  ;;  %p2362_p9 = por %p444_p6, %p443_p4 }
  0x1c   : > { %p556_p10 = pnand %p1813_p7, %p555_p8  ;;  %s424_s17 = ssub.s32 %s2205_s24, %s2763_s29 }
  0x1d   : > { %s2726_s16 = scalar_select %p2362_p9, 1, 0 }
  0x1e   : > { %s427_s26 = sadd.s32 1, %s2189_s20  ;;  %p425_p11 = scmp.eq.s32.totalorder %s424_s17, 0 }
  0x1f   : > { %2727 = sst [smem:[#allocation17_spill]] %s2726_s16  ;;  %559 = sbr.rel (%p556_p10) target bundleno = 3025 (0xbd1), region = 80 }
  0x20   : > { %s2370_s28 = scalar_select %p425_p11, %s2189_s20, %s427_s26  }
  0x21   : > { %s2696_s27 = sand.u32 (!%p556_p10), 1, %s2185_s19   ;;  %p646_p12 = scmp.lt.s32.totalorder (!%p556_p10), %s2197_s22, 1 }
  0x22   : > { %2728 = sst [smem:[#allocation18_spill]] %s2370_s28  ;;  %s2376_s23 = sshll.u32 (!%p556_p10), %s2696_s27, 3 }
  0x23   : > { %p650_p13 = scmp.lt.s32.totalorder (!%p556_p10), %s2193_s21, 1  ;;  %s2729_s0 = sld [smem:[#allocation19_spill]] (!%p556_p10) }
  0x24   : > { %s2731_s3 = sld [smem:[#allocation21_spill]] (!%p556_p10)  ;;  %s2732_s5 = sld [smem:[#allocation22_spill]] (!%p556_p10) }
  0x25   : > { %s645_s14 = scalar_lea.vmem (!%p556_p10), [#allocation3], %s2376_s23 }
  0x26   : > { %s647_s16 = scalar_select %p646_p12, %s2197_s22, 1 }
  0x27   : > { %s2381_s18 = scalar_select %p650_p13, %s2193_s21, 1 }
  0x28   : > { %s1815_s17 = sshll.u32 %s647_s16, 3  ;;  %s2733_s22 = sld [smem:[#allocation9_spill]] }
  0x29   : > { %s649_s27 = scalar_lea.vmem %s2729_s0, %s1815_s17  ;;  %s1865_s19 = sshll.u32 %s2381_s18, 4 }
  0x2a   : > { %s2398_s13 = scalar_lea.vmem %s2731_s3, %s1865_s19  ;;  %s2407_s0 = scalar_lea.vmem %s2732_s5, %s1865_s19 }
  0x2b   : > { %s677_s3 = scalar_lea.vmem %s2684_s8, %s2381_s18  ;;  %s2424_s16 = scalar_lea.vmem %s2685_s9, %s1865_s19 }
  0x2c   : > { %s685_s29 = scalar_lea.vmem %s2686_s10, %s2381_s18  ;;  %s1868_s5 = sshll.u32 %s2381_s18, 6 }
  0x2d   : > { %s693_s15 = scalar_lea.vmem %s2688_s12, %s2381_s18  ;;  %s2438_s20 = scalar_lea.vmem %s2687_s11, %s1868_s5 }
  0x2e   : > { %p1824_p0 = scmp.ne.s32.totalorder %s2733_s22, 0 }
  0x2f   : > { %v699_v0 = vld [vmem:[%s649_s27] sm:$0xff] (!%p1824_p0)  ;;  %vm700_vm0 = vcmask (!%p1824_p0), 261120  }
  0x30   : > { %698 = sbr.rel (%p1824_p0) target bundleno = 55 (0x37), region = 84  ;;  %701 = vst.msk [vmem:[#allocation2] sm:$0xff] (!%p1824_p0), %vm700_vm0, %v699_v0 }
  0x37 PF: > { %v2442_v1 = vld [vmem:[#allocation2] sm:$0xff]  ;;  %vm711_vm1 = vcmask 261120   ;;  %v2211_v9 = vmov 0.0   ;;  %vm2212_vm2 = vmmov 0   ;;  %v2078_v10 = vld [vmem:[%s2398_s13 + $0x8] sm:$0xff]   ;;  %s2735_s21 = sld [smem:[#allocation20_spill]]  ;;  %s2737_s28 = scalar_lea.vmem %s2680_s4, %s2381_s18  ;;  %v703_v42 = vlaneseq }
  0x38   : > { %v712_v2 = vsel %vm711_vm1, %v2442_v1, 0.0  ;;  %v2077_v8 = vld [vmem:[%s2398_s13] sm:$0xff]   ;;  %1903 = vmatprep.subr.bf16.mxu0 %v2211_v9  ;;  %1907 = vmatprep.mubr.msk.bf16.mxu0 %vm2212_vm2, %v2211_v9  ;;  %s2734_s13 = scalar_lea.vmem %s2677_s1, %s2381_s18  ;;  %s2213_s30 = smov 104   ;;  %vm824_vm3 = vcmask 64512   ;;  %v2217_v46 = vmov -1e+30  }
  0x39   : > { %713 = vadd.xlane.f32.xlu0 %v712_v2  ;;  %1904 = vmatpush3.bf16.msra.mxu0 %v2077_v8  ;;  %v1825_v15 = vld [vmem:[%s2734_s13] ss:$0 sm:$0xff]  ;;  %s2214_s25 = smov 120   ;;  %s2215_s22 = smov 112   ;;  %v704_v43 = vshrl.u32 %v703_v42, 7  ;;  %v706_v44 = vand.u32 127, %v703_v42 }
  0x3a   : > { %1923 = vmatprep.subr.bf16.mxu1 %v2211_v9  ;;  %1905 = vmatprep.subr.bf16.mxu0 %v2211_v9  ;;  %v1827_v21 = vld [vmem:[%s2737_s28] ss:$0 sm:$0xff]  ;;  %s2216_s2 = smov 96   ;;  %s2218_s5 = smov 64   ;;  %vm1079_vm5 = vcmask 1043456   ;;  %vm1280_vm6 = vcmask 130048  }
  0x3b   : > { %1925 = vmatprep.mubr.msk.bf16.mxu1 %vm2212_vm2, %v2211_v9  ;;  %vm707_vm4 = vcmp.ge.s32.totalorder %v704_v43, %v706_v44  ;;  %s2219_s13 = smov 8   ;;  %s2220_s19 = smov 16   ;;  %vm1282_vm7 = vcmask 195584  }
  0x3c   : > { %v708_v47 = vsel %vm707_vm4, 0.0, %v2217_v46  ;;  %s2221_s27 = smov 24   ;;  %s2739_s28 = scalar_lea.vmem %s2683_s7, %s2381_s18 }
  0x3d   : > { %1906 = vmatpush3.bf16.msra.mxu0 %v2078_v10  ;;  %s2736_s26 = scalar_lea.vmem %s2735_s21, %s2381_s18 }
  0x3e   : > { %1911 = vmatprep.subr.bf16.mxu0 %v2211_v9  ;;  %v1826_v17 = vld [vmem:[%s2736_s26] ss:$0 sm:$0xff]  ;;  %s2738_s26 = scalar_lea.vmem %s2682_s6, %s2381_s18 }
  0xc6   : > { %v714_v3 = vpop.xlane.xlu0 %713 }
  0xc7   : > { %v716_v4 = vmul.f32 0.03125, %v714_v3 }
  0xc9   : > { %v717_v5 = vsub.f32 %v2442_v1, %v716_v4 }
  0xcb   : > { %v718_v6 = vmul.f32 %v717_v5, %v717_v5 }
  0xcd   : > { %v719_v7 = vsel %vm711_vm1, %v718_v6, 0.0 }
  0xce   : > { %720 = vadd.xlane.f32.xlu0 %v719_v7 }
 0x15b   : > { %v721_v11 = vpop.xlane.xlu0 %720 }
 0x15c   : > { %v722_v12 = vmul.f32 0.03125, %v721_v11 }
 0x15e   : > { %v723_v13 = vadd.f32 1e-05, %v722_v12 }
 0x160   : > { %2091 = vrsqrt.f32 %v723_v13 }
 0x16a   : > { %v2092_v14 = vpop.eup %2091 }
 0x16b   : > { %v725_v16 = vmul.f32 %v2092_v14, %v717_v5 }
 0x16d   : > { %v732_v18 = vmul.f32 %v1825_v15, %v725_v16 }
 0x16f   : > { %v739_v19 = vadd.f32 %v1826_v17, %v732_v18 }
 0x171   : > { %v740_v20 = vpack.c.bf16 %v739_v19, %v739_v19 }
 0x173   : > { %1908 = vmatmul.mubr.msk.bf16.vlgmr.msra.gmra.mrb[0].mxu0 %vm711_vm1, %v740_v20 }
 0x174   : > { %1913 = vmatprep.mubr.msk.bf16.mxu0 %vm2212_vm2, %v2211_v9 }
 0x246   : > { %v801_v22 = vpop.f32.mrb[0].mxu0 }
 0x247   : > { %v802_v23 = vadd.f32 %v1827_v21, %v801_v22  ;;  %v1909_v24 = vpop.f32.mrb[1].mxu0 }
 0x248   : > { %v804_v25 = vpop.f32.mrb[2].mxu0 }
 0x249   : > { %814 = vrot.lane.b32.xlu0 %v802_v23, %s2213_s30  ;;  %808 = vrot.lane.b32.xlu1 %v802_v23, %s2214_s25  ;;  %v1910_v26 = vpop.f32.mrb[3].mxu0  ;;  %v2476_v27 = vpack.c.bf16 %v802_v23, %v802_v23 }
 0x24d   : > { %811 = vrot.lane.b32.xlu1 %v802_v23, %s2215_s22  ;;  %s2740_s22 = sld [smem:[#allocation9_spill]] }
 0x251   : > { %822 = vrot.lane.b32.xlu1 %v2476_v27, %s2216_s2 }
 0x253   : > { %p1858_p1 = scmp.ne.s32.totalorder %s2740_s22, 1 }
 0x2bb   : > { %v809_v28 = vpop.permute.xlu1 %808  ;;  %v815_v32 = vpop.permute.xlu0 %814 }
 0x2bc   : > { %v2479_v29 = vpack.c.bf16 %v809_v28, %v809_v28  ;;  %v2485_v34 = vpack.c.bf16 %v815_v32, %v815_v32 }
 0x2be   : > { %872 = vrot.lane.b32.xlu1 %v2479_v29, %s2216_s2 }
 0x2bf   : > { %v812_v30 = vpop.permute.xlu1 %811 }
 0x2c0   : > { %v2482_v31 = vpack.c.bf16 %v812_v30, %v812_v30 }
 0x2c2   : > { %921 = vrot.lane.b32.xlu1 %v2482_v31, %s2216_s2 }
 0x2c3   : > { %v823_v33 = vpop.permute.xlu1 %822 }
 0x2c4   : > { %v829_v35 = vsel %vm824_vm3, %v823_v33, 0 }
 0x2c5   : > { %1912 = vmatpush3.bf16.xpose.msra.mxu0 %v829_v35 }
 0x2c6   : > { %970 = vrot.lane.b32.xlu1 %v2485_v34, %s2216_s2  ;;  %1917 = vmatprep.subr.bf16.mxu0 %v2211_v9  ;;  %s2741_s2 = sld [smem:[#allocation23_spill]] (!%p1858_p1) }
 0x2cc   : > { %1914 = vmatmul.mubr.msk.bf16.vlgmr.msra.gmra.mrb[4].mxu0 %vm824_vm3, %v2476_v27 }
 0x2cd   : > { %1919 = vmatprep.mubr.msk.bf16.mxu0 %vm2212_vm2, %v2211_v9 }
 0x330   : > { %v873_v36 = vpop.permute.xlu1 %872 }
 0x331   : > { %v878_v37 = vsel %vm824_vm3, %v873_v36, 0 }
 0x332   : > { %1918 = vmatpush3.bf16.xpose.msra.mxu0 %v878_v37 }
 0x333   : > { %1929 = vmatprep.subr.bf16.mxu0 %v2211_v9 }
 0x334   : > { %v922_v38 = vpop.permute.xlu1 %921 }
 0x335   : > { %v927_v39 = vsel %vm824_vm3, %v922_v38, 0 }
 0x336   : > { %1924 = vmatpush3.bf16.xpose.msra.mxu1 %v927_v39 }
 0x337   : > { %1935 = vmatprep.subr.bf16.mxu1 %v2211_v9 }
 0x338   : > { %v971_v40 = vpop.permute.xlu1 %970 }
 0x339   : > { %v976_v41 = vsel %vm824_vm3, %v971_v40, 0  ;;  %1920 = vmatmul.mubr.msk.bf16.vlgmr.msra.gmra.mrb[8].mxu0 %vm824_vm3, %v2479_v29 }
 0x33a   : > { %1930 = vmatpush3.bf16.xpose.msra.mxu0 %v976_v41  ;;  %1931 = vmatprep.mubr.msk.bf16.mxu0 %vm2212_vm2, %v2211_v9 }
 0x33b   : > { %1941 = vmatprep.subr.bf16.mxu0 %v2211_v9 }
 0x33d   : > { %1926 = vmatmul.mubr.msk.bf16.vlgmr.msra.gmra.mrb[0].mxu1 %vm824_vm3, %v2482_v31 }
 0x33e   : > { %1937 = vmatprep.mubr.msk.bf16.mxu1 %vm2212_vm2, %v2211_v9 }
 0x341   : > { %1932 = vmatmul.mubr.msk.bf16.vlgmr.msra.gmra.mrb[12].mxu0 %vm824_vm3, %v2485_v34 }
 0x342   : > { %1943 = vmatprep.mubr.msk.bf16.mxu0 %vm2212_vm2, %v2211_v9 }
 0x39f   : > { %v865_v45 = vpop.f32.mrb[4].mxu0 }
 0x3a0   : > { %v1018_v48 = vmul.f32 0.35355338, %v865_v45  ;;  %v1915_v49 = vpop.f32.mrb[5].mxu0 }
 0x3a1   : > { %v868_v50 = vpop.f32.mrb[6].mxu0 }
 0x3a2   : > { %v1916_v51 = vpop.f32.mrb[7].mxu0  ;;  %v1022_v52 = vadd.f32 %v1018_v48, %v708_v47 }
 0x3a4   : > { %v1026_v53 = vsel %vm824_vm3, %v1022_v52, -inf }
 0x3a5   : > { %1027 = vmax.xlane.f32.xlu1 %v1026_v53 }
 0x40c   : > { %v914_v54 = vpop.f32.mrb[8].mxu0 }
 0x40d   : > { %v1019_v55 = vmul.f32 0.35355338, %v914_v54  ;;  %v1921_v56 = vpop.f32.mrb[9].mxu0 }
 0x40e   : > { %v917_v57 = vpop.f32.mrb[10].mxu0 }
 0x40f   : > { %v1922_v58 = vpop.f32.mrb[11].mxu0  ;;  %v1023_v59 = vadd.f32 %v1019_v55, %v708_v47 }
 0x410   : > { %v963_v60 = vpop.f32.mrb[0].mxu1 }
 0x411   : > { %v1020_v61 = vmul.f32 0.35355338, %v963_v60  ;;  %v1927_v62 = vpop.f32.mrb[1].mxu1  ;;  %v1029_v63 = vsel %vm824_vm3, %v1023_v59, -inf }
 0x412   : > { %v966_v0 = vpop.f32.mrb[2].mxu1  ;;  %1030 = vmax.xlane.f32.xlu0 %v1029_v63  ;;  %v2080_v62 = vld [vmem:[%s2407_s0 + $0x8] sm:$0xff]  }
 0x413   : > { %v1928_v2 = vpop.f32.mrb[3].mxu1  ;;  %v1024_v3 = vadd.f32 %v1020_v61, %v708_v47  ;;  %v2079_v61 = vld [vmem:[%s2407_s0] sm:$0xff]  }
 0x414   : > { %v1012_v4 = vpop.f32.mrb[12].mxu0 }
 0x415   : > { %v1021_v5 = vmul.f32 0.35355338, %v1012_v4  ;;  %v1933_v6 = vpop.f32.mrb[13].mxu0  ;;  %v1032_v7 = vsel %vm824_vm3, %v1024_v3, -inf }
 0x416   : > { %1033 = vmax.xlane.f32.xlu1 %v1032_v7  ;;  %v1015_v8 = vpop.f32.mrb[14].mxu0 }
 0x417   : > { %v1934_v10 = vpop.f32.mrb[15].mxu0  ;;  %v1025_v11 = vadd.f32 %v1021_v5, %v708_v47 }
 0x419   : > { %v1035_v12 = vsel %vm824_vm3, %v1025_v11, -inf }
 0x41a   : > { %1036 = vmax.xlane.f32.xlu0 %v1035_v12 }
 0x427   : > { %1074 = vrot.lane.b32.xlu1 %v2476_v27, %s2218_s5 }
 0x432   : > { %v1028_v13 = vpop.xlane.xlu1 %1027 }
 0x433   : > { %v1038_v14 = vsub.f32 %v1022_v52, %v1028_v13 }
 0x435   : > { %v1042_v15 = vmul.f32 1.442695, %v1038_v14 }
 0x437   : > { %2093 = vpow2.f32 %v1042_v15 }
 0x441   : > { %v2094_v16 = vpop.eup %2093 }
 0x442   : > { %v1050_v17 = vsel %vm824_vm3, %v2094_v16, 0.0 }
 0x44b   : > { %1051 = vadd.xlane.f32.xlu1 %v1050_v17 }
 0x49f   : > { %v1031_v18 = vpop.xlane.xlu0 %1030 }
 0x4a0   : > { %v1039_v19 = vsub.f32 %v1023_v59, %v1031_v18 }
 0x4a2   : > { %v1044_v20 = vmul.f32 1.442695, %v1039_v19 }
 0x4a3   : > { %v1034_v21 = vpop.xlane.xlu1 %1033 }
 0x4a4   : > { %2095 = vpow2.f32 %v1044_v20  ;;  %v1040_v22 = vsub.f32 %v1024_v3, %v1034_v21  ;;  %v1839_v20 = vld [vmem:[%s2738_s26] ss:$0 sm:$0xff] }
 0x4a6   : > { %v1046_v23 = vmul.f32 1.442695, %v1040_v22 }
 0x4a7   : > { %v1075_v24 = vpop.permute.xlu1 %1074  ;;  %v1037_v25 = vpop.xlane.xlu0 %1036 }
 0x4a8   : > { %2097 = vpow2.f32 %v1046_v23  ;;  %v1081_v26 = vsel %vm1079_vm5, %v1075_v24, 0  ;;  %v1041_v27 = vsub.f32 %v1025_v11, %v1037_v25 }
 0x4a9   : > { %1936 = vmatpush3.bf16.msra.mxu1 %v1081_v26 }
 0x4aa   : > { %v1048_v28 = vmul.f32 1.442695, %v1041_v27  ;;  %1947 = vmatprep.subr.bf16.mxu1 %v2211_v9 }
 0x4ac   : > { %2099 = vpow2.f32 %v1048_v28 }
 0x4ae   : > { %v2096_v30 = vpop.eup %2095 }
 0x4af   : > { %v1053_v32 = vsel %vm824_vm3, %v2096_v30, 0.0 }
 0x4b0   : > { %1054 = vadd.xlane.f32.xlu0 %v1053_v32 }
 0x4b2   : > { %v2098_v33 = vpop.eup %2097 }
 0x4b3   : > { %v1056_v35 = vsel %vm824_vm3, %v2098_v33, 0.0 }
 0x4b4   : > { %1057 = vadd.xlane.f32.xlu1 %v1056_v35 }
 0x4b6   : > { %v2100_v36 = vpop.eup %2099 }
 0x4b7   : > { %v1059_v37 = vsel %vm824_vm3, %v2100_v36, 0.0 }
 0x4b8   : > { %1060 = vadd.xlane.f32.xlu0 %v1059_v37 }
 0x4c5   : > { %1171 = vrot.lane.b32.xlu1 %v2482_v31, %s2218_s5 }
 0x4c9   : > { %1219 = vrot.lane.b32.xlu1 %v2485_v34, %s2218_s5 }
 0x4ce   : > { %1123 = vrot.lane.b32.xlu0 %v2479_v29, %s2218_s5 }
 0x4d8   : > { %v1052_v38 = vpop.xlane.xlu1 %1051 }
 0x4d9   : > { %2101 = vrcp.f32 %v1052_v38 }
 0x4e3   : > { %v2102_v39 = vpop.eup %2101 }
 0x4e4   : > { %v1066_v40 = vmul.f32 %v2102_v39, %v2094_v16 }
 0x4e6   : > { %v1070_v41 = vpack.c.bf16 %v1066_v40, %v1066_v40 }
 0x4e8   : > { %1938 = vmatmul.mubr.msk.bf16.vlgmr.msra.gmra.mrb[4].mxu1 %vm824_vm3, %v1070_v41  ;;  %v1843_v41 = vld [vmem:[%s2739_s28] ss:$0 sm:$0xff] }
 0x4e9   : > { %1949 = vmatprep.mubr.msk.bf16.mxu1 %vm2212_vm2, %v2211_v9 }
 0x53d   : > { %v1055_v42 = vpop.xlane.xlu0 %1054 }
 0x53e   : > { %2103 = vrcp.f32 %v1055_v42 }
 0x541   : > { %v1058_v43 = vpop.xlane.xlu1 %1057 }
 0x542   : > { %2105 = vrcp.f32 %v1058_v43  ;;  %v1844_v43 = vld [vmem:[%s677_s3] ss:$0 sm:$0xff] }
 0x545   : > { %v1172_v31 = vpop.permute.xlu1 %1171  ;;  %v1061_v44 = vpop.xlane.xlu0 %1060 }
 0x546   : > { %v1177_v34 = vsel %vm1079_vm5, %v1172_v31, 0  ;;  %2107 = vrcp.f32 %v1061_v44 }
 0x547   : > { %1948 = vmatpush3.bf16.msra.mxu1 %v1177_v34 }
 0x548   : > { %v2104_v29 = vpop.eup %2103  ;;  %1959 = vmatprep.subr.bf16.mxu1 %v2211_v9 }
 0x549   : > { %v1067_v45 = vmul.f32 %v2104_v29, %v2096_v30  ;;  %v1124_v46 = vpop.permute.xlu0 %1123  ;;  %v1220_v48 = vpop.permute.xlu1 %1219  ;;  %v2083_v29 = vld [vmem:[%s2438_s20] sm:$0xff]  }
 0x54a   : > { %v1129_v47 = vsel %vm1079_vm5, %v1124_v46, 0  ;;  %v1225_v52 = vsel %vm1079_vm5, %v1220_v48, 0  ;;  %v2085_v46 = vld [vmem:[%s2438_s20 + $0x10] sm:$0xff]   ;;  %v2087_v48 = vld [vmem:[%s2438_s20 + $0x20] sm:$0xff]  }
 0x54b   : > { %1942 = vmatpush3.bf16.msra.mxu0 %v1129_v47  ;;  %v1071_v49 = vpack.c.bf16 %v1067_v45, %v1067_v45  ;;  %v2084_v45 = vld [vmem:[%s2438_s20 + $0x8] sm:$0xff]   ;;  %v2086_v47 = vld [vmem:[%s2438_s20 + $0x18] sm:$0xff]  }
 0x54c   : > { %v2106_v50 = vpop.eup %2105  ;;  %1953 = vmatprep.subr.bf16.mxu0 %v2211_v9 }
 0x54d   : > { %v1068_v51 = vmul.f32 %v2106_v50, %v2098_v33  ;;  %v2089_v50 = vld [vmem:[%s2438_s20 + $0x30] sm:$0xff]  }
 0x54e   : > { %1944 = vmatmul.mubr.msk.bf16.vlgmr.msra.gmra.mrb[16].mxu0 %vm824_vm3, %v1071_v49  ;;  %v2088_v49 = vld [vmem:[%s2438_s20 + $0x28] sm:$0xff]  }
 0x54f   : > { %1954 = vmatpush3.bf16.msra.mxu0 %v1225_v52  ;;  %v1072_v53 = vpack.c.bf16 %v1068_v51, %v1068_v51  ;;  %1955 = vmatprep.mubr.msk.bf16.mxu0 %vm2212_vm2, %v2211_v9  ;;  %v2090_v51 = vld [vmem:[%s2438_s20 + $0x38] sm:$0xff]   ;;  %v1845_v52 = vld [vmem:[%s685_s29] ss:$0 sm:$0xff] }
 0x550   : > { %v2108_v54 = vpop.eup %2107  ;;  %1967 = vmatprep.subr.bf16.mxu0 %v2211_v9 }
 0x551   : > { %v1069_v55 = vmul.f32 %v2108_v54, %v2100_v36  ;;  %1950 = vmatmul.mubr.msk.bf16.vlgmr.msra.gmra.mrb[8].mxu1 %vm824_vm3, %v1072_v53  ;;  %v2081_v36 = vld [vmem:[%s2424_s16] sm:$0xff]  }
 0x552   : > { %1963 = vmatprep.mubr.msk.bf16.mxu1 %vm2212_vm2, %v2211_v9  ;;  %1960 = vmatpush3.bf16.msra.mxu1 %v2079_v61 }
 0x553   : > { %v1073_v56 = vpack.c.bf16 %v1069_v55, %v1069_v55  ;;  %1961 = vmatprep.subr.bf16.mxu1 %v2211_v9 }
 0x556   : > { %1956 = vmatmul.mubr.msk.bf16.vlgmr.msra.gmra.mrb[20].mxu0 %vm824_vm3, %v1073_v56  ;;  %1962 = vmatpush3.bf16.msra.mxu1 %v2080_v62 }
 0x557   : > { %1971 = vmatprep.mubr.msk.bf16.mxu0 %vm2212_vm2, %v2211_v9  ;;  %1975 = vmatprep.subr.bf16.mxu1 %v2211_v9 }
 0x558   : > { %1968 = vmatpush3.bf16.msra.mxu0 %v2081_v36 }
 0x559   : > { %1969 = vmatprep.subr.bf16.mxu0 %v2211_v9 }
 0x5bb   : > { %v1117_v57 = vpop.f32.mrb[4].mxu1 }
 0x5bc   : > { %v1939_v58 = vpop.f32.mrb[5].mxu1 }
 0x5bd   : > { %v1120_v59 = vpop.f32.mrb[6].mxu1 }
 0x5be   : > { %v1940_v60 = vpop.f32.mrb[7].mxu1 }
 0x621   : > { %v1165_v63 = vpop.f32.mrb[16].mxu0 }
 0x622   : > { %1268 = vrot.lane.b32.xlu0 %v1165_v63, %s2219_s13  ;;  %v1945_v0 = vpop.f32.mrb[17].mxu0 }
 0x623   : > { %v1168_v2 = vpop.f32.mrb[18].mxu0 }
 0x624   : > { %v1946_v3 = vpop.f32.mrb[19].mxu0  ;;  %v1213_v4 = vpop.f32.mrb[8].mxu1 }
 0x625   : > { %1272 = vrot.lane.b32.xlu1 %v1213_v4, %s2220_s19  ;;  %v1951_v5 = vpop.f32.mrb[9].mxu1  ;;  %v1849_v4 = vld [vmem:[%s693_s15] ss:$0 sm:$0xff]  ;;  %s2742_s19 = sld [smem:[#allocation24_spill]] (!%p1858_p1) }
 0x626   : > { %v1216_v6 = vpop.f32.mrb[10].mxu1 }
 0x627   : > { %v1952_v7 = vpop.f32.mrb[11].mxu1 }
 0x629   : > { %v1261_v8 = vpop.f32.mrb[20].mxu0 }
 0x62a   : > { %1276 = vrot.lane.b32.xlu0 %v1261_v8, %s2221_s27  ;;  %v1957_v10 = vpop.f32.mrb[21].mxu0 }
 0x62b   : > { %v1264_v11 = vpop.f32.mrb[22].mxu0 }
 0x62c   : > { %v1958_v12 = vpop.f32.mrb[23].mxu0 }
 0x694   : > { %v1269_v13 = vpop.permute.xlu0 %1268 }
 0x695   : > { %v1279_v15 = vsel %vm824_vm3, %v1117_v57, %v1269_v13 }
 0x697   : > { %v1273_v14 = vpop.permute.xlu1 %1272 }
 0x698   : > { %v1281_v16 = vsel %vm1280_vm6, %v1279_v15, %v1273_v14 }
 0x69c   : > { %v1277_v17 = vpop.permute.xlu0 %1276 }
 0x69d   : > { %v1283_v18 = vsel %vm1282_vm7, %v1281_v16, %v1277_v17 }
 0x69e   : > { %v1284_v19 = vpack.c.bf16 %v1283_v18, %v1283_v18 }
 0x6a0   : > { %1964 = vmatmul.mubr.msk.bf16.vlgmr.msra.gmra.mrb[12].mxu1 %vm711_vm1, %v1284_v19 }
 0x6a1   : > { %1991 = vmatprep.mubr.msk.bf16.mxu1 %vm2212_vm2, %v2211_v9  ;;  %1976 = vmatpush3.bf16.msra.mxu1 %v2083_v29 }
 0x6a2   : > { %1977 = vmatprep.subr.bf16.mxu1 %v2211_v9 }
 0x6a5   : > { %1978 = vmatpush3.bf16.msra.mxu1 %v2084_v45 }
 0x6a6   : > { %1979 = vmatprep.subr.bf16.mxu1 %v2211_v9 }
 0x6a9   : > { %1980 = vmatpush3.bf16.msra.mxu1 %v2085_v46 }
 0x6aa   : > { %1981 = vmatprep.subr.bf16.mxu1 %v2211_v9 }
 0x6ad   : > { %1982 = vmatpush3.bf16.msra.mxu1 %v2086_v47 }
 0x6ae   : > { %1983 = vmatprep.subr.bf16.mxu1 %v2211_v9 }
 0x6b1   : > { %1984 = vmatpush3.bf16.msra.mxu1 %v2087_v48 }
 0x6b2   : > { %1985 = vmatprep.subr.bf16.mxu1 %v2211_v9 }
 0x6b5   : > { %1986 = vmatpush3.bf16.msra.mxu1 %v2088_v49 }
 0x6b6   : > { %1987 = vmatprep.subr.bf16.mxu1 %v2211_v9 }
 0x6b9   : > { %1988 = vmatpush3.bf16.msra.mxu1 %v2089_v50 }
 0x6ba   : > { %1989 = vmatprep.subr.bf16.mxu1 %v2211_v9 }
 0x6bd   : > { %1990 = vmatpush3.bf16.msra.mxu1 %v2090_v51 }
 0x773   : > { %v1345_v21 = vpop.f32.mrb[12].mxu1 }
 0x774   : > { %v1346_v22 = vadd.f32 %v1839_v20, %v1345_v21  ;;  %v1965_v23 = vpop.f32.mrb[13].mxu1 }
 0x775   : > { %v1348_v24 = vpop.f32.mrb[14].mxu1 }
 0x776   : > { %v2562_v25 = vadd.f32 %v1346_v22, %v2442_v1  ;;  %v1966_v26 = vpop.f32.mrb[15].mxu1  ;;  %v2082_v1 = vld [vmem:[%s2424_s16 + $0x8] sm:$0xff]   ;;  %v1859_v22 = vld [vmem:[%s2741_s2] ss:$0 sm:$0xff] (!%p1858_p1) }
 0x777   : > { %1970 = vmatpush3.bf16.msra.mxu0 %v2082_v1  ;;  %v1860_v24 = vld [vmem:[%s2742_s19] ss:$0 sm:$0xff] (!%p1858_p1) }
 0x778   : > { %v1354_v27 = vsel %vm711_vm1, %v2562_v25, 0.0 }
 0x779   : > { %1355 = vadd.xlane.f32.xlu1 %v1354_v27 }
 0x806   : > { %v1356_v28 = vpop.xlane.xlu1 %1355 }
 0x807   : > { %v1357_v30 = vmul.f32 0.03125, %v1356_v28 }
 0x809   : > { %v1358_v32 = vsub.f32 %v2562_v25, %v1357_v30 }
 0x80b   : > { %v1359_v33 = vmul.f32 %v1358_v32, %v1358_v32 }
 0x80d   : > { %v1360_v35 = vsel %vm711_vm1, %v1359_v33, 0.0 }
 0x80e   : > { %1361 = vadd.xlane.f32.xlu0 %v1360_v35 }
 0x89b   : > { %v1362_v37 = vpop.xlane.xlu0 %1361 }
 0x89c   : > { %v1363_v38 = vmul.f32 0.03125, %v1362_v37 }
 0x89e   : > { %v1364_v39 = vadd.f32 1e-05, %v1363_v38 }
 0x8a0   : > { %2109 = vrsqrt.f32 %v1364_v39 }
 0x8aa   : > { %v2110_v40 = vpop.eup %2109 }
 0x8ab   : > { %v1366_v42 = vmul.f32 %v2110_v40, %v1358_v32 }
 0x8ad   : > { %v1373_v31 = vmul.f32 %v1843_v41, %v1366_v42 }
 0x8af   : > { %v1380_v44 = vadd.f32 %v1844_v43, %v1373_v31 }
 0x8b1   : > { %v1381_v34 = vpack.c.bf16 %v1380_v44, %v1380_v44 }
 0x8b3   : > { %1972 = vmatmul.mubr.msk.bf16.vlgmr.msra.gmra.mrb[24].mxu0 %vm711_vm1, %v1381_v34 }
 0x986   : > { %v1442_v53 = vpop.f32.mrb[24].mxu0 }
 0x987   : > { %v1443_v54 = vadd.f32 %v1845_v52, %v1442_v53  ;;  %v1973_v55 = vpop.f32.mrb[25].mxu0 }
 0x988   : > { %v1445_v56 = vpop.f32.mrb[26].mxu0 }
 0x989   : > { %v1448_v57 = vmul.f32 %v1443_v54, %v1443_v54  ;;  %v1974_v58 = vpop.f32.mrb[27].mxu0 }
 0x98b   : > { %v1449_v59 = vmul.f32 %v1448_v57, %v1443_v54 }
 0x98d   : > { %v1450_v60 = vmul.f32 0.044715, %v1449_v59 }
 0x98f   : > { %v1451_v61 = vadd.f32 %v1450_v60, %v1443_v54 }
 0x991   : > { %v1452_v62 = vmul.f32 0.7978846, %v1451_v61 }
 0x993   : > { %2111 = vtanh.f32 %v1452_v62 }
 0x99d   : > { %v2112_v63 = vpop.eup %2111 }
 0x99e   : > { %v1454_v9 = vadd.f32 1.0, %v2112_v63 }
 0x9a0   : > { %v1455_v0 = vmul.f32 0.5, %v1454_v9 }
 0x9a2   : > { %v1456_v2 = vmul.f32 %v1455_v0, %v1443_v54 }
 0x9a4   : > { %v1457_v3 = vpack.c.bf16 %v1456_v2, %v1456_v2 }
 0x9a6   : > { %1992 = vmatmul.mubr.bf16.vlgmr.msra.gmra.mrb[16].mxu1 %v1457_v3 }
 0xa78   : > { %1574 = sbr.rel (%p1858_p1) target bundleno = 3000 (0xbb8), region = 88 }
 0xa79   : > { %v1563_v5 = vpop.f32.mrb[16].mxu1 }
 0xa7a   : > { %v1564_v6 = vadd.f32 %v1849_v4, %v1563_v5  ;;  %v1993_v7 = vpop.f32.mrb[17].mxu1 }
 0xa7b   : > { %v1566_v8 = vpop.f32.mrb[18].mxu1 }
 0xa7c   : > { %v1569_v10 = vadd.f32 %v1564_v6, %v2562_v25  ;;  %v1994_v11 = vpop.f32.mrb[19].mxu1 }
 0xa7e   : > { %1570 = vst.msk [vmem:[#allocation2] sm:$0xff] %vm711_vm1, %v1569_v10  ;;  %v1577_v12 = vsel (!%p1858_p1), %vm711_vm1, %v1569_v10, 0.0 }
 0xa7f   : > { %1578 = vadd.xlane.f32.xlu0 %v1577_v12 }
 0xb0c   : > { %v1579_v13 = vpop.xlane.xlu0 %1578 }
 0xb0d   : > { %v1580_v14 = vmul.f32 0.03125, %v1579_v13 }
 0xb0f   : > { %v1581_v15 = vsub.f32 %v1569_v10, %v1580_v14 }
 0xb11   : > { %v1582_v16 = vmul.f32 %v1581_v15, %v1581_v15 }
 0xb13   : > { %v1583_v17 = vsel %vm711_vm1, %v1582_v16, 0.0 }
 0xb14   : > { %1584 = vadd.xlane.f32.xlu0 %v1583_v17 }
 0xba1   : > { %v1585_v18 = vpop.xlane.xlu0 %1584 }
 0xba2   : > { %v1586_v19 = vmul.f32 0.03125, %v1585_v18 }
 0xba4   : > { %v1587_v20 = vadd.f32 1e-05, %v1586_v19 }
 0xba6   : > { %2113 = vrsqrt.f32 %v1587_v20 }
 0xbb0   : > { %v2114_v21 = vpop.eup %2113 }
 0xbb1   : > { %v1589_v23 = vmul.f32 %v2114_v21, %v1581_v15 }
 0xbb3   : > { %v1596_v25 = vmul.f32 %v1859_v22, %v1589_v23 }
 0xbb5   : > { %v1603_v26 = vadd.f32 %v1860_v24, %v1596_v25 }
 0xbb7   : > { %1604 = vst.msk [vmem:[%s645_s14] sm:$0xff] %vm711_vm1, %v1603_v26 }
 0xbb8 PF: > { %s2743_s27 = sld [smem:[#allocation10_spill]]  ;;  %s2744_s0 = sld [smem:[#allocation7_spill]] }
 0xbb9   : > { %s2746_s28 = sld [smem:[#allocation25_spill]]  ;;  %s1619_s25 = sshll.u32 %s645_s14, 4  ;;  %s1620_s25 = int_to_ptr.vmem [resolvable:$true] %s1619_s25 }
 0xbba   : > { %s2115_s20 = scalar_lea.vmem %s1620_s25, 128  ;;  %s2222_s29 = smov [#allocation3]  }
 0xbbb   : > { %p2116_p2 = scmp.ne.s32.totalorder %s1620_s25, %s2115_s20  ;;  %s2119_s22 = sshll.u32 %s2222_s29, 4  ;;  %s2120_s22 = int_to_ptr.vmem [resolvable:$false] %s2119_s22 }
 0xbbc   : > { %s2121_s18 = scalar_lea.vmem %s2120_s22, 256  ;;  %p2122_p6 = scmp.lt.s32.totalorder %s1620_s25, %s2120_s22 }
 0xbbd   : > { %p2117_p4 = pnand %p2116_p2, %p2352_p3  ;;  %p2123_p7 = scmp.lt.s32.totalorder %s2121_s18, %s2115_s20 }
 0xbbe   : > { %s1862_s26 = sshll.u32 %s2743_s27, 7  ;;  %s2747_s3 = sand.u32 1, %s2744_s0  }
 0xbbf   : > { %s2625_s30 = scalar_lea.hbm %s2746_s28, %s1862_s26  ;;  %s1606_s16 = scalar_lea.sflag [#allocation4], %s2747_s3 }
 0xbc0   : > { %p2118_p5 = pneg %p2117_p4  ;;  %p2124_p8 = por %p2123_p7, %p2122_p6 }
 0xbc2   : > { %p2125_p10 = pnand %p2124_p8, %p2118_p5 }
 0xbc4   : > { %2128 = shalt.err (!%p2125_p10)
}
 0xbc5   : > { %s2129_s23 = scalar_lea.hbm %s2625_s30, 128  ;;  %s2133_s2 = scalar_lea.hbm %s2746_s28, 256 }
 0xbc6   : > { %p2130_p11 = scmp.ne.s32.totalorder %s2625_s30, %s2129_s23  ;;  %p2134_p0 = scmp.lt.u32.totalorder %s2625_s30, %s2746_s28 }
 0xbc7   : > { %p2135_p1 = scmp.lt.u32.totalorder %s2133_s2, %s2129_s23  ;;  %p2137_p4 = scmp.lt.u32.totalorder %s2129_s23, %s2625_s30 }
 0xbc8   : > { %p2131_p12 = pnand %p2130_p11, %p2352_p3 }
 0xbc9   : > { %p2136_p2 = por %p2135_p1, %p2134_p0 }
 0xbca   : > { %p2132_p13 = pneg %p2131_p12 }
 0xbcb   : > { %p2138_p5 = por %p2137_p4, %p2136_p2 }
 0xbcd   : > { %p2139_p6 = pnand %p2138_p5, %p2132_p13 }
 0xbcf   : > { %2142 = shalt.err (!%p2139_p6)
}
 0xbd0   : > { %1995 = dma.vmem_to_hbm [thread:$0]  (%p2352_p3), %s1620_s25, 128, %s2625_s30, %s1606_s16  }
 0xbd1 PF: > { %s2748_s19 = sld [smem:[#allocation13_spill]]  ;;  %s2749_s27 = sld [smem:[#allocation6_spill]] }
 0xbd7   : > { %p2001_p7 = scmp.ge.s32.totalorder %s2748_s19, 2  ;;  %s1631_s26 = sand.u32 1, %s2749_s27  }
 0xbd8   : > { %s1632_s17 = scalar_lea.sflag [#allocation4], %s1631_s26 }
 0xbd9   : > { %p1998_p8 = pnand %p2001_p7, %p2362_p9 }
 0xbdb   : > { %2176 = dma.done.wait (!%p1998_p8), %s1632_s17, 128  }
 0xbdc   : > { %2178 = vsyncadd (!%p1998_p8), %s1632_s17, 4294967168  ;;  %s28_s25 = sadd.s32 1, %s2748_s19   ;;  %s2751_s18 = sld [smem:[#allocation7_spill]] }
 0xbdd   : > { %p25_p10 = scmp.ge.s32.totalorder %s28_s25, 6   ;;  %s2752_s19 = sld [smem:[#allocation8_spill]] }
 0xbde   : > { %s2753_s20 = sld [smem:[#allocation18_spill]]  ;;  %s2754_s21 = sld [smem:[#allocation11_spill]] }
 0xbdf   : > { %s2755_s22 = sld [smem:[#allocation12_spill]]  ;;  %s2756_s23 = sld [smem:[#allocation14_spill]] }
 0xbe0   : > { %s2757_s24 = sld [smem:[#allocation16_spill]]  ;;  %27 = sbr.rel (!%p25_p10) target bundleno = 13 (0xd), region = 159 }
 0xbe7   :  { %1637 = vsyncpa [#allocation4], 1 }
 0xbe8   :  { %1639 = vsyncpa [#allocation4 + $0x1], 1 }

</bundles_post_ra>
